<compile_context>
chip_gen: v5e
topology: v5e:2x2
jax: 0.10.0
libtpu: 0.0.40
codegen_flags: <defaults>
</compile_context>

<pallas_src>
import jax
import jax.numpy as jnp
from jax.experimental import pallas as pl
from jax.experimental.pallas import tpu as pltpu


def bert_pooling_kernel(x_ref, wt_ref, b_ref, o_ref):
    # x_ref:  [TB, H_in]     bf16 activation tile (streamed, double-buffered)
    # wt_ref: [H_in, H_out]  bf16 weight, resident (constant index_map, 1-buffered)
    # b_ref:  [1, H_out]     f32 bias, resident
    # o_ref:  [TB, H_out]
    y = jnp.dot(x_ref[...], wt_ref[...], preferred_element_type=jnp.float32)
    y = y + b_ref[...]
    # tanh in f32 on the EUP, then cast once for the store.
    o_ref[...] = jnp.tanh(y).astype(o_ref.dtype)


def prepare_bert_pooling_params(weight, bias, *, param_dtype=jnp.bfloat16):
    """One-time (parameter-load-time) conversion of PyTorch nn.Linear params.

    weight: [H_out, H_in] (PyTorch layout) -> wt [H_in, H_out] in param_dtype.
    bias:   [H_out]                        -> [1, H_out] f32.
    Doing the transpose/cast here keeps it out of the per-call forward path.
    """
    wt = jnp.asarray(weight).T.astype(param_dtype)
    b2 = jnp.asarray(bias).reshape(1, -1).astype(jnp.float32)
    return wt, b2


def _pick_batch_tile(batch, block_b):
    """Pick (tile, padded_batch): tile divides padded_batch (pad <= 7 rows),
    preferring >= 2 grid steps so v7x can shard the parallel axis."""
    b_pad = ((batch + 7) // 8) * 8
    candidates = [c for c in (block_b, 512, 256, 128, 64, 32, 16, 8) if c <= b_pad]
    divisors = [c for c in candidates if b_pad % c == 0]
    multi = [c for c in divisors if b_pad // c >= 2]
    if multi:
        tb = multi[0]          # largest divisor still yielding >= 2 tiles
    elif divisors:
        tb = divisors[0]
    else:
        tb = b_pad
    return tb, b_pad


def bert_pooling(x, wt, bias2d, *, block_b=512, compute_dtype=jnp.bfloat16,
                 out_dtype=None):
    """BERT pooler forward: tanh(x @ wt + bias).

    x:      [B, H_in]
    wt:     [H_in, H_out]  (already transposed, see prepare_bert_pooling_params)
    bias2d: [1, H_out]
    returns [B, H_out] in out_dtype (defaults to compute_dtype).
    """
    B, H_in = x.shape
    H_in_w, H_out = wt.shape
    assert H_in == H_in_w, (H_in, H_in_w)
    out_dtype = compute_dtype if out_dtype is None else out_dtype

    x_c = x.astype(compute_dtype)
    wt_c = wt.astype(compute_dtype)
    b_c = bias2d.astype(jnp.float32)

    tb, b_pad = _pick_batch_tile(B, block_b)
    x_in = x_c if b_pad == B else jnp.pad(x_c, ((0, b_pad - B), (0, 0)))

    cost = pl.CostEstimate(
        flops=2 * b_pad * H_in * H_out,
        transcendentals=b_pad * H_out,
        bytes_accessed=(x_in.size * x_in.dtype.itemsize
                        + wt_c.size * wt_c.dtype.itemsize
                        + b_c.size * 4
                        + b_pad * H_out * jnp.dtype(out_dtype).itemsize),
    )

    # Note: at BERT pooler sizes (H <= 1024) the full bf16 weight is < 2 MiB,
    # so keeping it resident is cheap; for very large hidden sizes an extra
    # grid axis over H_out would bound VMEM to H_in * tn instead.
    out = pl.pallas_call(
        bert_pooling_kernel,
        out_shape=jax.ShapeDtypeStruct((b_pad, H_out), out_dtype),
        grid_spec=pltpu.PrefetchScalarGridSpec(
            num_scalar_prefetch=0,
            grid=(b_pad // tb,),
            in_specs=[
                # x tiles stream through VMEM (double-buffered by Pallas).
                pl.BlockSpec((tb, H_in), lambda i: (i, 0)),
                # Weight & bias: constant index_map -> fetched once, resident;
                # single-buffered since they never change across the grid.
                pl.BlockSpec((H_in, H_out), lambda i: (0, 0),
                             pipeline_mode=pl.Buffered(1)),
                pl.BlockSpec((1, H_out), lambda i: (0, 0),
                             pipeline_mode=pl.Buffered(1)),
            ],
            out_specs=pl.BlockSpec((tb, H_out), lambda i: (i, 0)),
        ),
        compiler_params=pltpu.CompilerParams(
            # Independent batch tiles -> megacore sharding on v7x.
            dimension_semantics=("parallel",),
            # Past the v5e (16 MiB) / v6e (32 MiB) scoped defaults so larger
            # activation tiles fit; still leaves headroom on v7x (64 MiB).
            vmem_limit_bytes=64 << 20,
        ),
        cost_estimate=cost,
    )(x_in, wt_c, b_c)

    return out if b_pad == B else out[:B]


if __name__ == "__main__":
    key = jax.random.PRNGKey(0)
    kx, kw, kb = jax.random.split(key, 3)

    # Small test shape: B=16 -> tile chooser picks tb=8, grid=2 (exercises the
    # multi-tile, weight-resident path).
    B, H = 16, 128
    x = jax.random.normal(kx, (B, H), dtype=jnp.float32)
    weight = jax.random.normal(kw, (H, H), dtype=jnp.float32) * 0.02  # PyTorch [out,in]
    bias = jax.random.normal(kb, (H,), dtype=jnp.float32) * 0.02

    wt, b2 = prepare_bert_pooling_params(weight, bias)      # load-time transpose/cast
    out = jax.block_until_ready(bert_pooling(x, wt, b2))
    ref = jnp.tanh(x @ weight.T + bias)
    assert out.shape == (B, H)
    assert jnp.allclose(out.astype(jnp.float32), ref, atol=2e-2, rtol=2e-2)

    # Second check: larger batch/hidden, still multi-tile.
    B2, H2 = 256, 256
    x2 = jax.random.normal(kx, (B2, H2), dtype=jnp.float32)
    w2 = jax.random.normal(kw, (H2, H2), dtype=jnp.float32) * 0.02
    b2v = jax.random.normal(kb, (H2,), dtype=jnp.float32) * 0.02
    wt2, bias2 = prepare_bert_pooling_params(w2, b2v)
    out2 = jax.block_until_ready(bert_pooling(x2, wt2, bias2))
    ref2 = jnp.tanh(x2 @ w2.T + b2v)
    assert out2.shape == (B2, H2)
    assert jnp.allclose(out2.astype(jnp.float32), ref2, atol=2e-2, rtol=2e-2)

    print("KERNEL_OK")
</pallas_src>

<mosaic_0001>
module attributes {stable_mosaic.version = 11 : i64} {
  func.func @bert_pooling_kernel(%arg0: i32, %arg1: memref<8x128xbf16, #tpu.memory_space<vmem>>, %arg2: memref<128x128xbf16, #tpu.memory_space<vmem>>, %arg3: memref<1x128xf32, #tpu.memory_space<vmem>>, %arg4: memref<8x128xbf16, #tpu.memory_space<vmem>>) attributes {dimension_semantics = [#tpu.dimension_semantics<parallel>], iteration_bounds = array<i64: 2>, scalar_prefetch = 0 : i64, scratch_operands = 0 : i64, tpu.core_type = #tpu.core_type<tc>, window_params = [{transform_indices = @transform_0, window_bounds = array<i64: 8, 128>}, {pipeline_mode = #tpu.pipeline_mode<synchronous>, transform_indices = @transform_1, window_bounds = array<i64: 128, 128>}, {pipeline_mode = #tpu.pipeline_mode<synchronous>, transform_indices = @transform_2, window_bounds = array<i64: 1, 128>}, {transform_indices = @transform_3, window_bounds = array<i64: 8, 128>}]} {
    %c0 = arith.constant 0 : index
    %c0_0 = arith.constant 0 : index
    %0 = vector.load %arg1[%c0, %c0_0] : memref<8x128xbf16, #tpu.memory_space<vmem>>, vector<8x128xbf16>
    %c0_1 = arith.constant 0 : index
    %c0_2 = arith.constant 0 : index
    %1 = vector.load %arg2[%c0_1, %c0_2] : memref<128x128xbf16, #tpu.memory_space<vmem>>, vector<128x128xbf16>
    %cst = arith.constant dense<0.000000e+00> : vector<8x128xf32>
    %2 = tpu.matmul %0, %1, %cst {dimension_numbers = #tpu.dot_dimension_numbers<[1], [0], [0], [1], [0, 0, 1, 1], [], []>} : vector<8x128xbf16>, vector<128x128xbf16>, vector<8x128xf32> -> vector<8x128xf32>
    %c0_3 = arith.constant 0 : index
    %c0_4 = arith.constant 0 : index
    %3 = vector.load %arg3[%c0_3, %c0_4] : memref<1x128xf32, #tpu.memory_space<vmem>>, vector<1x128xf32>
    %4 = vector.broadcast %3 : vector<1x128xf32> to vector<8x128xf32>
    %5 = arith.addf %2, %4 : vector<8x128xf32>
    %6 = math.tanh %5 : vector<8x128xf32>
    %7 = arith.truncf %6 : vector<8x128xf32> to vector<8x128xbf16>
    %c0_5 = arith.constant 0 : index
    %c0_6 = arith.constant 0 : index
    %8 = vector.load %arg4[%c0_5, %c0_6] : memref<8x128xbf16, #tpu.memory_space<vmem>>, vector<8x128xbf16>
    tpu.vector_store %arg4[%c0_5, %c0_6], %7 {strides = array<i32>} : memref<8x128xbf16, #tpu.memory_space<vmem>>, vector<8x128xbf16>,
    return
  }
  func.func @transform_0(%arg0: i32) -> (i32, i32) {
    %c0_i32 = arith.constant 0 : i32
    %c0_i32_0 = arith.constant 0 : i32
    return %arg0, %c0_i32 : i32, i32
  }
  func.func @transform_1(%arg0: i32) -> (i32, i32) {
    %c0_i32 = arith.constant 0 : i32
    %c0_i32_0 = arith.constant 0 : i32
    %c0_i32_1 = arith.constant 0 : i32
    return %c0_i32, %c0_i32_0 : i32, i32
  }
  func.func @transform_2(%arg0: i32) -> (i32, i32) {
    %c0_i32 = arith.constant 0 : i32
    %c0_i32_0 = arith.constant 0 : i32
    %c0_i32_1 = arith.constant 0 : i32
    return %c0_i32, %c0_i32_0 : i32, i32
  }
  func.func @transform_3(%arg0: i32) -> (i32, i32) {
    %c0_i32 = arith.constant 0 : i32
    %c0_i32_0 = arith.constant 0 : i32
    return %arg0, %c0_i32 : i32, i32
  }
}

</mosaic_0001>

<bundles_post_ra>
// kernel: tpu_custom_call.1
= control target key start
LH: loop header
LB: loop body
LE: loop exit
PB: predicated region body
PF: predicated region fallthrough
CT: control target
= control target key end

     0   :  { %8 = vsyncpa [#allocation3], 0  ;;  %s800_s0 = inlined_call_operand.hbm [shape: bf16[16,128], index: 0, kind: input, shape index: {}]   ;;  %s801_s1 = inlined_call_operand.hbm [shape: bf16[128,128], index: 1, kind: input, shape index: {}]   ;;  %s802_s2 = inlined_call_operand.vmem [shape: f32[1,128], index: 2, kind: input, shape index: {}]   ;;  %s803_s3 = inlined_call_operand.hbm [shape: bf16[16,128], index: 3, kind: output, shape index: {}]  }
   0x1   :  { %10 = vsyncpa [#allocation3 + $0x1], 0 }
   0x2   :  { %11 = vsyncpa [#allocation6], 0 }
   0x3   :  { %12 = vsyncpa [#allocation4], 0 }
   0x4   :  { %14 = vsyncpa [#allocation4 + $0x1], 0  ;;  %s657_s12 = smov 0   ;;  %s659_s13 = smov 0  }
   0x5   :  { %s661_s14 = smov 0   ;;  %s663_s15 = smov 0  }
   0x6 LB: > { %s130_s18 = sshll.u32 %s801_s1, 4  ;;  %s681_s19 = sadd.s32 4294967295, %s632_s15   ;;  %s632_s15 = sphi %s663_s15, %s813_s15   ;;  %s628_s14 = sphi %s661_s14, %s812_s14   ;;  %s624_s13 = sphi %s659_s13, %s811_s13   ;;  %s620_s12 = sphi %s657_s12, %s810_s12   ;;  %s131_s18 = int_to_ptr.hbm [resolvable:$true] %s130_s18 }
   0x7   : > { %p387_p0 = scmp.ge.s32.totalorder %s632_s15, 1  ;;  %p41_p1 = scmp.eq.s32.totalorder %s681_s19, 0 }
   0x8   : > { %p119_p2 = scmp.lt.s32.totalorder %s632_s15, 3  ;;  %s634_s21 = smov [#allocation5]  }
   0x9   : > { %s132_s22 = sshll.u32 %s634_s21, 4  ;;  %s635_s23 = smov 64   ;;  %s133_s22 = int_to_ptr.vmem [resolvable:$true] %s132_s22 }
   0xa   : > { %p686_p3 = pnand %p387_p0, %p119_p2  ;;  %s636_s24 = smov 4  }
   0xb   : > { %s386_s25 = sadd.s32 4294967294, %s632_s15   ;;  %s697_s26 = sadd.s32 1, %s632_s15  }
   0xc   : > { %p448_p4 = pneg %p686_p3  ;;  %s27_s27 = sadd.s32 1, %s628_s14 }
   0xd   : > { %s24_s28 = ssub.s32 %s632_s15, %s697_s26  ;;  %p34_p7 = scmp.ne.s32.totalorder %s628_s14, %s624_s13 }
   0xe   : > { %p449_p6 = pnand %p448_p4, %p41_p1  ;;  %p25_p8 = scmp.eq.s32.totalorder %s24_s28, 0 }
   0xf   : > { %p35_p9 = scmp.eq.s32.totalorder %s632_s15, 0  ;;  %p40_p10 = scmp.ne.s32.totalorder %s624_s13, %s620_s12 }
  0x10   : > { %451 = dma.hbm_to_vmem [thread:$0]  (!%p449_p6), %s131_s18, 1024, %s133_s22, [#allocation6], %s635_s23, %s635_s23, %s636_s24  }
  0x11   : > { %p106_p11 = scmp.eq.s32.totalorder %s681_s19, 1  ;;  %p713_p12 = por %p41_p1, %p40_p10 }
  0x12   : > { %s709_s29 = scalar_select %p25_p8, %s628_s14, %s27_s27  }
  0x13   : > { %p717_p13 = por %p106_p11, %p34_p7  ;;  %p112_p0 = scmp.eq.s32.totalorder %s386_s25, 1 }
  0x14   : > { %p36_p2 = por %p35_p9, %p34_p7  ;;  %s149_s5 = sand.u32 1, %s628_s14  }
  0x15   : > { %p722_p4 = por %p112_p0, %p40_p10  ;;  %p461_p6 = scmp.lt.s32.totalorder %s632_s15, 2 }
  0x16   : > { %s390_s7 = sshll.u32 %s149_s5, 2  ;;  %s391_s8 = sshll.u32 %s632_s15, 2 }
  0x17   : > { %s157_s11 = scalar_lea.hbm %s800_s0, %s391_s8  ;;  %s153_s17 = scalar_lea.vmem [#allocation2], %s390_s7 }
  0x18   : > { %s159_s16 = sshll.u32 %s157_s11, 4  ;;  %s161_s18 = sshll.u32 %s153_s17, 4  ;;  %s160_s16 = int_to_ptr.hbm [resolvable:$true] %s159_s16  ;;  %s162_s18 = int_to_ptr.vmem [resolvable:$true] %s161_s18 }
  0x19   : > { %p731_p8 = pnand %p461_p6, %p36_p2  ;;  %s150_s22 = scalar_lea.sflag [#allocation3], %s149_s5 }
  0x1a   : > { %s532_s23 = sshra.s32 %s160_s16, 4  ;;  %s539_s28 = scalar_lea.hbm %s800_s0, 8  ;;  %s533_s23 = int_to_ptr.hbm [resolvable:$true] %s532_s23 }
  0x1b   : > { %s534_s24 = scalar_lea.hbm %s533_s23, 4  ;;  %p536_p9 = pneg %p731_p8 }
  0x1c   : > { %p535_p7 = scmp.ne.s32.totalorder %s533_s23, %s534_s24  ;;  %p540_p0 = scmp.lt.s32.totalorder %s533_s23, %s800_s0 }
  0x1d   : > { %p541_p2 = scmp.lt.s32.totalorder %s539_s28, %s534_s24 }
  0x1e   : > { %p537_p10 = pnand %p536_p9, %p535_p7 }
  0x1f   : > { %p542_p6 = por %p541_p2, %p540_p0 }
  0x20   : > { %p538_p11 = pneg %p537_p10 }
  0x22   : > { %p543_p5 = pnand %p542_p6, %p538_p11 }
  0x24   : > { %546 = shalt.err (!%p543_p5)
}
  0x25   : > { %455 = dma.hbm_to_vmem [thread:$0]  (!%p731_p8), %s160_s16, 64, %s162_s18, %s150_s22  }
  0x26   : > { %170 = sbr.rel (%p686_p3) target bundleno = 218 (0xda), region = 32  ;;  %s748_s5 = sand.u32 (!%p686_p3), 1, %s624_s13  }
  0x27   : > { %s393_s9 = sshll.u32 (!%p686_p3), %s748_s5, 2  ;;  %s173_s10 = scalar_lea.sflag (!%p686_p3), [#allocation3], %s748_s5 }
  0x28   : > { %s176_s11 = scalar_lea.vmem (!%p686_p3), [#allocation2], %s393_s9 }
  0x2b   : > { %607 = dma.done.wait (%p713_p12), %s173_s10, 64  }
  0x2c   : > { %609 = vsyncadd (%p713_p12), %s173_s10, 4294967232 }
  0x2d   : > { %611 = dma.done.wait (%p41_p1), [#allocation6], 1024  }
  0x2e   : > { %613 = vsyncadd (%p41_p1), [#allocation6], 4294966272  ;;  %v439_v0 = vld [vmem:[#allocation5 + $0x38] sm:$0xff]  ;;  %v438_v1 = vld [vmem:[#allocation5 + $0x30] sm:$0xff]  ;;  %s429_s16 = sshll.u32 %s681_s19, 2  ;;  %s204_s22 = scalar_lea.vmem [#allocation7], %s393_s9 }
  0x2f   : > { %274 = vmatpush.bf16.msra.mxu0 %v439_v0  ;;  %v437_v2 = vld [vmem:[#allocation5 + $0x28] sm:$0xff]  ;;  %v436_v3 = vld [vmem:[#allocation5 + $0x20] sm:$0xff]  ;;  %v435_v4 = vld [vmem:[#allocation5 + $0x18] sm:$0xff]  ;;  %s301_s21 = scalar_lea.hbm %s803_s3, %s429_s16  ;;  %s303_s23 = sshll.u32 %s204_s22, 4  ;;  %s304_s23 = int_to_ptr.vmem [resolvable:$true] %s303_s23 }
  0x30   : > { %v434_v5 = vld [vmem:[#allocation5 + $0x10] sm:$0xff]  ;;  %v433_v6 = vld [vmem:[#allocation5 + $0x8] sm:$0xff]  ;;  %v432_v7 = vld [vmem:[#allocation5] sm:$0xff]  ;;  %s305_s24 = sshll.u32 %s301_s21, 4  ;;  %s291_s25 = scalar_lea.sflag [#allocation4], %s748_s5  ;;  %s306_s24 = int_to_ptr.hbm [resolvable:$true] %s305_s24 }
  0x31   : > { %v205_v8 = vld [vmem:[%s176_s11] sm:$0xf]  ;;  %s576_s27 = sshra.s32 %s306_s24, 4  ;;  %s582_s8 = scalar_lea.hbm %s803_s3, 8  ;;  %s577_s27 = int_to_ptr.hbm [resolvable:$true] %s576_s27 }
  0x32   : > { %v499_v9 = vld [vmem:[%s802_s2] ss:$0 sm:$0xff]  ;;  %s578_s19 = scalar_lea.hbm %s577_s27, 4  ;;  %p583_p12 = scmp.lt.s32.totalorder %s577_s27, %s803_s3 }
  0x33   : > { %275 = vmatpush.bf16.msra.mxu0 %v438_v1  ;;  %p579_p1 = scmp.ne.s32.totalorder %s577_s27, %s578_s19  ;;  %p584_p8 = scmp.lt.s32.totalorder %s582_s8, %s578_s19 }
  0x35   : > { %p580_p3 = pnand %p579_p1, %p717_p13  ;;  %p585_p7 = por %p584_p8, %p583_p12 }
  0x37   : > { %276 = vmatpush.bf16.msra.mxu0 %v437_v2  ;;  %p581_p5 = pneg %p580_p3 }
  0x39   : > { %p586_p9 = pnand %p585_p7, %p581_p5 }
  0x3b   : > { %277 = vmatpush.bf16.msra.mxu0 %v436_v3 }
  0x3f   : > { %278 = vmatpush.bf16.msra.mxu0 %v435_v4 }
  0x43   : > { %279 = vmatpush.bf16.msra.mxu0 %v434_v5 }
  0x47   : > { %280 = vmatpush.bf16.msra.mxu0 %v433_v6 }
  0x4b   : > { %281 = vmatpush.bf16.msra.mxu0 %v432_v7 }
  0x4e   : > { %282 = vmatmul.bf16.vlgmr.msra.gmra.mxu0 %v205_v8 }
  0xcb   : > { %v283_v10 = vpop.f32.mrf.mxu0 }
  0xcc   : > { %v284_v11 = vadd.f32 %v499_v9, %v283_v10 }
  0xce   : > { %500 = vtanh.f32 %v284_v11 }
  0xd3   : > { %v285_v12 = vpop.f32.mrf.mxu0 }
  0xd4   : > { %v501_v13 = vpop.eup %500 }
  0xd5   : > { %v288_v14 = vpack.c.bf16 %v501_v13, %v501_v13 }
  0xd7   : > { %289 = vst [vmem:[%s204_s22] sm:$0xf] %v288_v14 }
  0xd8   : > { %589 = shalt.err (!%p586_p9)
}
  0xd9   : > { %446 = dma.vmem_to_hbm [thread:$0]  (%p717_p13), %s304_s23, 64, %s306_s24, %s291_s25  }
  0xda PF: > { %s317_s5 = sand.u32 1, %s620_s12   ;;  %p809_p10 = scmp.ge.s32.totalorder %s632_s15, 2 }
  0xdb   : > { %s318_s11 = scalar_lea.sflag [#allocation4], %s317_s5 }
  0xdc   : > { %p457_p11 = pnand %p809_p10, %p722_p4 }
  0xde   : > { %p458_p0 = pneg %p457_p11 }
  0xe0   : > { %615 = dma.done.wait (%p458_p0), %s318_s11, 64  }
  0xe1   : > { %617 = vsyncadd (%p458_p0), %s318_s11, 4294967232  ;;  %p17_p2 = scmp.ge.s32.totalorder %s697_s26, 4   ;;  %s810_s12 = smov %s624_s13 }
  0xe2   : > { %s811_s13 = smov %s628_s14  ;;  %s812_s14 = smov %s709_s29 }
  0xe3   : > { %s813_s15 = smov %s697_s26  ;;  %19 = sbr.rel (!%p17_p2) target bundleno = 6 (0x6), region = 81 }
  0xe8   :  { %324 = vsyncpa [#allocation3], 1 }
  0xe9   :  { %326 = vsyncpa [#allocation3 + $0x1], 1 }
  0xea   :  { %327 = vsyncpa [#allocation6], 1 }
  0xeb   :  { %328 = vsyncpa [#allocation4], 1 }
  0xec   :  { %330 = vsyncpa [#allocation4 + $0x1], 1 }

</bundles_post_ra>
